<compile_context>
chip_gen: v7x
topology: tpu7x:2x2x1
jax: 0.10.0
libtpu: 0.0.40
codegen_flags: <defaults>
</compile_context>

<pallas_src>
import functools

import jax
import jax.numpy as jnp
from jax.experimental import pallas as pl
from jax.experimental.pallas import tpu as pltpu

_MIB = 1024 * 1024


def _round_up(n, m):
    return ((n + m - 1) // m) * m


def _vmem_capacity_bytes():
    """Per-TensorCore VMEM (64 MiB on v7x, 128 MiB on v5e/v6e); safe fallback 64 MiB."""
    try:
        cap = int(pltpu.get_tpu_info().vmem_capacity_bytes)
        if cap > 0:
            return cap
    except Exception:  # not on TPU / API shape changed -> conservative default
        pass
    return 64 * _MIB


def _pick_ff_tile(d_ff, max_tile):
    """Largest lane-aligned divisor of d_ff <= max_tile.

    Prefers multiples of 256 (full MXU occupancy on v6e/v7x), falls back to
    multiples of 128 (v5e / odd d_ff), else keeps the full d_ff resident.
    """
    if d_ff <= max_tile:
        return d_ff
    for step in (256, 128):
        t = (max_tile // step) * step
        while t >= step:
            if d_ff % t == 0:
                return t
            t -= step
    return d_ff


def _ffn_resident_kernel(x_ref, w1_ref, b1_ref, w2_ref, b2_ref, o_ref):
    """Whole-d_ff step: weights are VMEM-resident (constant index_map), no accumulator."""
    x = x_ref[...]                                            # (tm, d_model)
    # Linear 1 on the MXU with f32 accumulation.
    h = jnp.dot(x, w1_ref[...], preferred_element_type=jnp.float32)
    h = h + b1_ref[...]                                       # f32 bias-add
    h = h * jax.nn.sigmoid(h)                                 # Swish in f32 (VPU + EUP)
    # Dropout = identity in eval mode.
    out = jnp.dot(h.astype(x.dtype), w2_ref[...],
                  preferred_element_type=jnp.float32)
    o_ref[...] = (out + b2_ref[...]).astype(o_ref.dtype)


def _ffn_slabbed_kernel(x_ref, w1_ref, b1_ref, w2_ref, b2_ref, o_ref, acc_ref):
    """One (row-tile, d_ff-slab) step: accumulate partial Linear2 over d_ff slabs."""
    j = pl.program_id(1)

    @pl.when(j == 0)
    def _init():
        acc_ref[...] = jnp.zeros_like(acc_ref)

    x = x_ref[...]                                            # (tm, d_model)
    h = jnp.dot(x, w1_ref[...], preferred_element_type=jnp.float32)
    h = h + b1_ref[...]                                       # (1, tf) broadcast, f32
    h = h * jax.nn.sigmoid(h)                                 # Swish in f32
    # Dropout = identity in eval mode.
    acc_ref[...] += jnp.dot(h.astype(x.dtype), w2_ref[...],
                            preferred_element_type=jnp.float32)

    @pl.when(j == pl.num_programs(1) - 1)
    def _finalize():
        o_ref[...] = (acc_ref[...] + b2_ref[...]).astype(o_ref.dtype)


@functools.partial(jax.jit, static_argnames=("tile_m", "max_ff_tile", "use_bf16_matmul"))
def conformer_feed_forward(x, w1, b1, w2, b2,
                           tile_m=None, max_ff_tile=1024, use_bf16_matmul=False):
    """x: (B, T, d_model); w1: (d_model, d_ff); b1: (d_ff,); w2: (d_ff, d_model); b2: (d_model,)."""
    B, T, d_model = x.shape
    d_ff = w1.shape[1]
    M = B * T
    out_dtype = x.dtype
    out_itemsize = jnp.dtype(out_dtype).itemsize

    if use_bf16_matmul:
        # bf16 MXU inputs with f32 accumulation (2-4x matmul throughput on v6e/v7x).
        x = x.astype(jnp.bfloat16)
        w1 = w1.astype(jnp.bfloat16)
        w2 = w2.astype(jnp.bfloat16)
    compute_dtype = x.dtype
    itemsize = jnp.dtype(compute_dtype).itemsize
    # Sublane packing minimum: f32 -> 8 rows, bf16 -> 16, int8/fp8 -> 32.
    row_align = {4: 8, 2: 16, 1: 32}.get(itemsize, 8)

    vmem_cap = _vmem_capacity_bytes()
    vmem_ceiling = vmem_cap - 8 * _MIB              # leave pipelining headroom

    # Biases stay f32 so bias-add / swish run in f32 regardless of matmul dtype.
    b1_2d = b1.astype(jnp.float32).reshape(1, d_ff)
    b2_2d = b2.astype(jnp.float32).reshape(1, d_model)

    # ---- weight-residency decision (per core; constant-index blocks are still
    #      double-buffered in VMEM, and each TC holds its own copy on v7x) ----
    weight_bytes = 2 * d_model * d_ff * itemsize + (d_ff + d_model) * 4
    resident_budget = min(24 * _MIB, vmem_cap // 3)
    resident = 2 * weight_bytes <= resident_budget

    # ---- row tile ----
    if tile_m is None:
        # Resident weights: modest tm keeps the (tm, d_ff) f32 swish slab small.
        # Streaming weights: large tm raises arithmetic intensity per weight fetch.
        tile_m = 256 if resident else 512
    tm = min(_round_up(tile_m, row_align), _round_up(M, row_align))
    tm = max(tm, row_align)

    tf = d_ff if resident else _pick_ff_tile(d_ff, max_ff_tile)

    def footprint(tm_):
        io = 2 * tm_ * d_model * (itemsize + out_itemsize)      # x + out tiles, double-buffered
        h = tm_ * tf * (4 + itemsize)                           # f32 swish slab + cast copy
        if resident:
            return 2 * weight_bytes + io + h
        wslab = 2 * (d_model * tf + tf * d_model) * itemsize + 2 * (tf + d_model) * 4
        acc = tm_ * d_model * 4
        return wslab + io + h + acc

    # Shrink tm until the footprint leaves headroom (keeps vreg/VMEM spill bounded).
    while footprint(tm) > vmem_ceiling and tm > row_align:
        tm = max(row_align, _round_up(tm // 2, row_align))

    # v7x megacore: make sure the "parallel" row axis has >= 2 tiles when possible.
    M_p = _round_up(M, tm)
    while M_p // tm < 2 and tm > row_align:
        tm = max(row_align, _round_up(tm // 2, row_align))
        M_p = _round_up(M, tm)

    x2d = x.reshape(M, d_model)
    if M_p != M:
        x2d = jnp.pad(x2d, ((0, M_p - M), (0, 0)))   # padded rows sliced off below

    num_row_tiles = M_p // tm
    vmem_limit = int(min(vmem_ceiling, max(32 * _MIB, footprint(tm) + 8 * _MIB)))

    # Advisory cost estimate: weights move once when resident, once per row tile when slabbed.
    weight_passes = 1 if resident else num_row_tiles
    cost = pl.CostEstimate(
        flops=4 * M * d_model * d_ff,                          # two matmuls
        transcendentals=M * d_ff,                              # sigmoid
        bytes_accessed=(M_p * d_model * itemsize               # x read
                        + M_p * d_model * out_itemsize         # out write
                        + weight_passes * 2 * d_model * d_ff * itemsize
                        + (d_ff + d_model) * 4),               # biases (f32)
    )

    if resident:
        grid_spec = pltpu.PrefetchScalarGridSpec(
            num_scalar_prefetch=0,
            grid=(num_row_tiles,),
            in_specs=[
                pl.BlockSpec((tm, d_model), lambda i: (i, 0)),      # x row tile
                pl.BlockSpec((d_model, d_ff), lambda i: (0, 0)),    # W1 (fetched once)
                pl.BlockSpec((1, d_ff), lambda i: (0, 0)),          # b1 (fetched once)
                pl.BlockSpec((d_ff, d_model), lambda i: (0, 0)),    # W2 (fetched once)
                pl.BlockSpec((1, d_model), lambda i: (0, 0)),       # b2 (fetched once)
            ],
            out_specs=pl.BlockSpec((tm, d_model), lambda i: (i, 0)),
        )
        kernel = _ffn_resident_kernel
        dim_semantics = ("parallel",)
    else:
        grid_spec = pltpu.PrefetchScalarGridSpec(
            num_scalar_prefetch=0,
            grid=(num_row_tiles, d_ff // tf),
            in_specs=[
                pl.BlockSpec((tm, d_model), lambda i, j: (i, 0)),   # x row tile
                pl.BlockSpec((d_model, tf), lambda i, j: (0, j)),   # W1 slab
                pl.BlockSpec((1, tf), lambda i, j: (0, j)),         # b1 slab
                pl.BlockSpec((tf, d_model), lambda i, j: (j, 0)),   # W2 slab
                pl.BlockSpec((1, d_model), lambda i, j: (0, 0)),    # b2
            ],
            out_specs=pl.BlockSpec((tm, d_model), lambda i, j: (i, 0)),
            scratch_shapes=[pltpu.VMEM((tm, d_model), jnp.float32)],
        )
        kernel = _ffn_slabbed_kernel
        dim_semantics = ("parallel", "arbitrary")

    out2d = pl.pallas_call(
        kernel,
        out_shape=jax.ShapeDtypeStruct((M_p, d_model), out_dtype),
        grid_spec=grid_spec,
        compiler_params=pltpu.CompilerParams(
            dimension_semantics=dim_semantics,
            vmem_limit_bytes=vmem_limit,
        ),
        cost_estimate=cost,
    )(x2d, w1, b1_2d, w2, b2_2d)

    if M_p != M:
        out2d = out2d[:M]
    return out2d.reshape(B, T, d_model)


def _reference(x, w1, b1, w2, b2):
    h = x @ w1 + b1
    h = h * jax.nn.sigmoid(h)
    return h @ w2 + b2


if __name__ == "__main__":
    # Small shapes consistent with the module's forward: (batch, seq, d_model).
    # T=10 deliberately exercises the padded-tail / row-tile-split path.
    B, T = 2, 10
    d_model, d_ff = 128, 512
    dropout_p = 0.1  # eval-mode -> identity

    key = jax.random.PRNGKey(0)
    kx, k1w, k1b, k2w, k2b = jax.random.split(key, 5)

    x = jax.random.normal(kx, (B, T, d_model), dtype=jnp.float32)

    # Deterministic init mirroring reset_parameters_ff (uniform(-1/sqrt(fan_in), +)).
    # PyTorch stores Linear weight as (out, in); we build (in, out) directly.
    ffn1_max = d_model ** -0.5
    ffn2_max = d_ff ** -0.5
    w1 = jax.random.uniform(k1w, (d_model, d_ff), jnp.float32, -ffn1_max, ffn1_max)
    b1 = jax.random.uniform(k1b, (d_ff,), jnp.float32, -ffn1_max, ffn1_max)
    w2 = jax.random.uniform(k2w, (d_ff, d_model), jnp.float32, -ffn2_max, ffn2_max)
    b2 = jax.random.uniform(k2b, (d_model,), jnp.float32, -ffn2_max, ffn2_max)

    out = conformer_feed_forward(x, w1, b1, w2, b2)
    out = jax.block_until_ready(out)

    ref = _reference(x, w1, b1, w2, b2)
    assert out.shape == (B, T, d_model)
    assert bool(jnp.all(jnp.isfinite(out)))
    # Tolerance covers MXU f32 pass-decomposition differences between the Pallas
    # matmul and the XLA reference dot on the same hardware.
    assert jnp.allclose(out, ref, atol=1e-2, rtol=1e-2), "mismatch vs reference"

    print("KERNEL_OK")
</pallas_src>

<mosaic_0001>
module attributes {stable_mosaic.version = 11 : i64} {
  func.func @_ffn_resident_kernel(%arg0: i32, %arg1: memref<16x128xf32, #tpu.memory_space<vmem>>, %arg2: memref<128x512xf32, #tpu.memory_space<vmem>>, %arg3: memref<1x512xf32, #tpu.memory_space<vmem>>, %arg4: memref<512x128xf32, #tpu.memory_space<vmem>>, %arg5: memref<1x128xf32, #tpu.memory_space<vmem>>, %arg6: memref<16x128xf32, #tpu.memory_space<vmem>>) attributes {dimension_semantics = [#tpu.dimension_semantics<parallel>], iteration_bounds = array<i64: 2>, scalar_prefetch = 0 : i64, scratch_operands = 0 : i64, tpu.core_type = #tpu.core_type<tc>, window_params = [{transform_indices = @transform_0, window_bounds = array<i64: 16, 128>}, {pipeline_mode = #tpu.pipeline_mode<synchronous>, transform_indices = @transform_1, window_bounds = array<i64: 128, 512>}, {pipeline_mode = #tpu.pipeline_mode<synchronous>, transform_indices = @transform_2, window_bounds = array<i64: 1, 512>}, {pipeline_mode = #tpu.pipeline_mode<synchronous>, transform_indices = @transform_3, window_bounds = array<i64: 512, 128>}, {pipeline_mode = #tpu.pipeline_mode<synchronous>, transform_indices = @transform_4, window_bounds = array<i64: 1, 128>}, {transform_indices = @transform_5, window_bounds = array<i64: 16, 128>}]} {
    %c0 = arith.constant 0 : index
    %c0_0 = arith.constant 0 : index
    %0 = vector.load %arg1[%c0, %c0_0] : memref<16x128xf32, #tpu.memory_space<vmem>>, vector<16x128xf32>
    %c0_1 = arith.constant 0 : index
    %c0_2 = arith.constant 0 : index
    %1 = vector.load %arg2[%c0_1, %c0_2] : memref<128x512xf32, #tpu.memory_space<vmem>>, vector<128x512xf32>
    %cst = arith.constant dense<0.000000e+00> : vector<16x512xf32>
    %2 = tpu.matmul %0, %1, %cst {dimension_numbers = #tpu.dot_dimension_numbers<[1], [0], [0], [1], [0, 0, 1, 1], [], []>} : vector<16x128xf32>, vector<128x512xf32>, vector<16x512xf32> -> vector<16x512xf32>
    %c0_3 = arith.constant 0 : index
    %c0_4 = arith.constant 0 : index
    %3 = vector.load %arg3[%c0_3, %c0_4] : memref<1x512xf32, #tpu.memory_space<vmem>>, vector<1x512xf32>
    %4 = vector.broadcast %3 : vector<1x512xf32> to vector<16x512xf32>
    %5 = arith.addf %2, %4 : vector<16x512xf32>
    %6 = arith.negf %5 : vector<16x512xf32>
    %7 = math.exp %6 : vector<16x512xf32>
    %cst_5 = arith.constant 1.000000e+00 : f32
    %8 = vector.broadcast %cst_5 : f32 to vector<16x512xf32>
    %9 = arith.addf %8, %7 : vector<16x512xf32>
    %10 = arith.divf %8, %9 : vector<16x512xf32>
    %11 = arith.mulf %5, %10 : vector<16x512xf32>
    %c0_6 = arith.constant 0 : index
    %c0_7 = arith.constant 0 : index
    %12 = vector.load %arg4[%c0_6, %c0_7] : memref<512x128xf32, #tpu.memory_space<vmem>>, vector<512x128xf32>
    %cst_8 = arith.constant dense<0.000000e+00> : vector<16x128xf32>
    %13 = tpu.matmul %11, %12, %cst_8 {dimension_numbers = #tpu.dot_dimension_numbers<[1], [0], [0], [1], [0, 0, 1, 1], [], []>} : vector<16x512xf32>, vector<512x128xf32>, vector<16x128xf32> -> vector<16x128xf32>
    %c0_9 = arith.constant 0 : index
    %c0_10 = arith.constant 0 : index
    %14 = vector.load %arg5[%c0_9, %c0_10] : memref<1x128xf32, #tpu.memory_space<vmem>>, vector<1x128xf32>
    %15 = vector.broadcast %14 : vector<1x128xf32> to vector<16x128xf32>
    %16 = arith.addf %13, %15 : vector<16x128xf32>
    %c0_11 = arith.constant 0 : index
    %c0_12 = arith.constant 0 : index
    %17 = vector.load %arg6[%c0_11, %c0_12] : memref<16x128xf32, #tpu.memory_space<vmem>>, vector<16x128xf32>
    tpu.vector_store %arg6[%c0_11, %c0_12], %16 {strides = array<i32>} : memref<16x128xf32, #tpu.memory_space<vmem>>, vector<16x128xf32>,
    return
  }
  func.func @transform_0(%arg0: i32) -> (i32, i32) {
    %c0_i32 = arith.constant 0 : i32
    %c0_i32_0 = arith.constant 0 : i32
    return %arg0, %c0_i32 : i32, i32
  }
  func.func @transform_1(%arg0: i32) -> (i32, i32) {
    %c0_i32 = arith.constant 0 : i32
    %c0_i32_0 = arith.constant 0 : i32
    %c0_i32_1 = arith.constant 0 : i32
    return %c0_i32, %c0_i32_0 : i32, i32
  }
  func.func @transform_2(%arg0: i32) -> (i32, i32) {
    %c0_i32 = arith.constant 0 : i32
    %c0_i32_0 = arith.constant 0 : i32
    %c0_i32_1 = arith.constant 0 : i32
    return %c0_i32, %c0_i32_0 : i32, i32
  }
  func.func @transform_3(%arg0: i32) -> (i32, i32) {
    %c0_i32 = arith.constant 0 : i32
    %c0_i32_0 = arith.constant 0 : i32
    %c0_i32_1 = arith.constant 0 : i32
    return %c0_i32, %c0_i32_0 : i32, i32
  }
  func.func @transform_4(%arg0: i32) -> (i32, i32) {
    %c0_i32 = arith.constant 0 : i32
    %c0_i32_0 = arith.constant 0 : i32
    %c0_i32_1 = arith.constant 0 : i32
    return %c0_i32, %c0_i32_0 : i32, i32
  }
  func.func @transform_5(%arg0: i32) -> (i32, i32) {
    %c0_i32 = arith.constant 0 : i32
    %c0_i32_0 = arith.constant 0 : i32
    return %arg0, %c0_i32 : i32, i32
  }
}

</mosaic_0001>

<bundles_post_ra>
// kernel: conformer_feed_forward.1
= control target key start
LH: loop header
LB: loop body
LE: loop exit
PB: predicated region body
PF: predicated region fallthrough
CT: control target
= control target key end

     0   :  { %10 = vsyncpa [#allocation3], 0  ;;  %s1379_s0 = inlined_call_operand.vmem [shape: f32[32,128], index: 0, kind: input, shape index: {}]   ;;  %s1380_s1 = inlined_call_operand.hbm [shape: f32[128,512], index: 1, kind: input, shape index: {}]   ;;  %s1381_s2 = inlined_call_operand.vmem [shape: f32[1,512], index: 2, kind: input, shape index: {}]   ;;  %s1382_s3 = inlined_call_operand.hbm [shape: f32[512,128], index: 3, kind: input, shape index: {}]   ;;  %s1383_s4 = inlined_call_operand.vmem [shape: f32[1,128], index: 4, kind: input, shape index: {}]   ;;  %s1384_s5 = inlined_call_operand.vmem [shape: f32[32,128], index: 5, kind: output, shape index: {}]  }
   0x1   :  { %11 = vsyncpa [#allocation5], 0  ;;  %s1260_s18 = smov 0  }
   0x2 LB: > { %s1223_s19 = smov [#allocation2]   ;;  %s857_s21 = sadd.s32 4294967295, %s1221_s18   ;;  %s1221_s18 = sphi %s1260_s18, %s17_s18  }
   0x3   : > { %s170_s20 = sshll.u32 %s1223_s19, 4  ;;  %p859_p0 = scmp.ge.s32.totalorder %s1221_s18, 1  ;;  %s171_s20 = int_to_ptr.vmem [resolvable:$true] %s170_s20 }
   0x4   : > { %p158_p1 = scmp.lt.s32.totalorder %s1221_s18, 3  ;;  %p1274_p3 = scmp.eq.s32.totalorder %s857_s21, 0 }
   0x5   : > { %s1224_s24 = smov [#allocation4]   ;;  %s1151_s29 = scalar_lea.hbm %s1380_s1, 8192 }
   0x6   : > { %p1268_p2 = pnand %p859_p0, %p158_p1  ;;  %s186_s25 = sshll.u32 %s1224_s24, 4  ;;  %s1286_s25 = int_to_ptr.vmem [resolvable:$true] %s186_s25 }
   0x7   : > { %s1389_s23 = scalar_select %p1274_p3, 1, 0 }
   0x8   : > { %s1388_s22 = scalar_select %p1268_p2, 1, 0 }
   0x9   : > { %p1093_p4 = pneg %p1268_p2  ;;  %p1152_p6 = scmp.ne.s32.totalorder %s1380_s1, %s1151_s29 }
   0xa   : > { %p1158_p10 = scmp.lt.u32.totalorder %s1151_s29, %s1380_s1 }
   0xb   : > { %p1282_p5 = pnand %p1274_p3, %p1093_p4 }
   0xd   : > { %p1153_p7 = pneg %p1282_p5 }
   0xf   : > { %p1154_p8 = pnand %p1153_p7, %p1152_p6 }
  0x11   : > { %p1155_p9 = pneg %p1154_p8 }
  0x13   : > { %p1160_p11 = pnand %p1158_p10, %p1155_p9 }
  0x15   : > { %1163 = shalt.err (!%p1160_p11)
}
  0x16   : > { %s1164_s9 = scalar_lea.vmem %s171_s20, 8192  ;;  %p1172_p1 = scmp.lt.s32.totalorder %s171_s20, %s171_s20 }
  0x17   : > { %p1165_p12 = scmp.ne.s32.totalorder %s171_s20, %s1164_s9  ;;  %p1173_p4 = scmp.lt.s32.totalorder %s1164_s9, %s1164_s9 }
  0x19   : > { %p1167_p13 = pnand %p1165_p12, %p1153_p7  ;;  %p1174_p3 = por %p1173_p4, %p1172_p1 }
  0x1b   : > { %p1168_p0 = pneg %p1167_p13 }
  0x1d   : > { %p1175_p2 = pnand %p1174_p3, %p1168_p0 }
  0x1f   : > { %1178 = shalt.err (!%p1175_p2)
}
  0x20   : > { %s1225_s10 = smov 512   ;;  %s1226_s11 = smov 32  }
  0x21   : > { %1096 = dma.hbm_to_vmem [thread:$0]  (!%p1282_p5), %s1380_s1, 8192, %s171_s20, [#allocation3], %s1225_s10, %s1225_s10, %s1226_s11  }
  0x22   : > { %s1179_s16 = scalar_lea.hbm %s1382_s3, 8192 }
  0x23   : > { %p1180_p6 = scmp.ne.s32.totalorder %s1382_s3, %s1179_s16  ;;  %p1186_p8 = scmp.lt.u32.totalorder %s1179_s16, %s1382_s3 }
  0x25   : > { %p1182_p2 = pnand %p1180_p6, %p1153_p7 }
  0x27   : > { %p1183_p3 = pneg %p1182_p2 }
  0x29   : > { %p1188_p9 = pnand %p1186_p8, %p1183_p3 }
  0x2b   : > { %1191 = shalt.err (!%p1188_p9)
}
  0x2c   : > { %s1192_s20 = scalar_lea.vmem %s1286_s25, 8192  ;;  %p1200_p13 = scmp.lt.s32.totalorder %s1286_s25, %s1286_s25 }
  0x2d   : > { %p1193_p10 = scmp.ne.s32.totalorder %s1286_s25, %s1192_s20  ;;  %p1201_p0 = scmp.lt.s32.totalorder %s1192_s20, %s1192_s20 }
  0x2f   : > { %p1195_p11 = pnand %p1193_p10, %p1153_p7  ;;  %p1202_p1 = por %p1201_p0, %p1200_p13 }
  0x31   : > { %p1196_p12 = pneg %p1195_p11 }
  0x33   : > { %p1203_p4 = pnand %p1202_p1, %p1196_p12 }
  0x35   : > { %1206 = shalt.err (!%p1203_p4)
}
  0x36   : > { %s1227_s28 = smov 128   ;;  %s1228_s29 = smov 8  }
  0x37   : > { %1099 = dma.hbm_to_vmem [thread:$0]  (!%p1282_p5), %s1382_s3, 8192, %s1286_s25, [#allocation5], %s1227_s28, %s1227_s28, %s1228_s29  }
  0x38   : > { %p1391_p6 = scmp.ne.s32.totalorder %s1388_s22, 0 }
  0x39   : > { %p1392_p7 = scmp.ne.s32.totalorder (!%p1391_p6), %s1389_s23, 0 }
  0x3a   : > { %214 = sbr.rel (%p1391_p6) target bundleno = 573 (0x23d), region = 40 }
  0x41   : > { %1212 = dma.done.wait (%p1392_p7), [#allocation3], 8192  }
  0x42   : > { %1214 = vsyncadd (%p1392_p7), [#allocation3], 4294959104 }
  0x43   : > { %1216 = dma.done.wait (%p1392_p7), [#allocation5], 8192  }
  0x44   : > { %1218 = vsyncadd (%p1392_p7), [#allocation5], 4294959104  ;;  %v1229_v0 = vmov 0.0   ;;  %v261_v1 = vld [vmem:[#allocation2 + $0x8] sm:$0xff]  ;;  %v263_v3 = vld [vmem:[#allocation2 + $0x18] sm:$0xff]  ;;  %s1349_s22 = sshll.u32 %s857_s21, 1 }
  0x45   : > { %410 = vmatprep.mubr.f32.mxu0 %v1229_v0  ;;  %487 = vmatprep.mubr.f32.mxu1 %v1229_v0  ;;  %v265_v2 = vld [vmem:[#allocation2 + $0x28] sm:$0xff]  ;;  %v267_v5 = vld [vmem:[#allocation2 + $0x38] sm:$0xff]  ;;  %v260_v6 = vld [vmem:[#allocation2] sm:$0xff]  ;;  %p247_p5 = scmp.lt.s32.totalorder %s1349_s22, 3 }
  0x46   : > { %v957_v4 = vpack.c.bf16 %v265_v2, %v261_v1  ;;  %v264_v7 = vld [vmem:[#allocation2 + $0x20] sm:$0xff]  ;;  %v989_v8 = vpack.c.bf16 %v267_v5, %v263_v3  ;;  %v262_v10 = vld [vmem:[#allocation2 + $0x10] sm:$0xff]  ;;  %v269_v12 = vld [vmem:[#allocation2 + $0x48] sm:$0xff] }
  0x47   : > { %v959_v9 = vpack.c.bf16 %v264_v7, %v260_v6  ;;  %v266_v11 = vld [vmem:[#allocation2 + $0x30] sm:$0xff]  ;;  %v273_v14 = vld [vmem:[#allocation2 + $0x68] sm:$0xff]  ;;  %v271_v15 = vld [vmem:[#allocation2 + $0x58] sm:$0xff]  ;;  %s1394_s22 = smov (!%p247_p5, %s1349_s22), 3 }
  0x48   : > { %958 = vmatprep.subr.bf16.mxu0 %v957_v4  ;;  %v991_v13 = vpack.c.bf16 %v266_v11, %v262_v10  ;;  %v275_v16 = vld [vmem:[#allocation2 + $0x78] sm:$0xff]  ;;  %990 = vmatprep.subr.bf16.mxu1 %v989_v8  ;;  %v961_v17 = vpack.c.bf16 %v273_v14, %v269_v12  ;;  %v268_v19 = vld [vmem:[#allocation2 + $0x40] sm:$0xff]  ;;  %v270_v21 = vld [vmem:[#allocation2 + $0x50] sm:$0xff]  ;;  %s867_s21 = sshll.u32 %s1394_s22, 3 }
  0x49   : > { %960 = vmatpush1.bf16.msra.mxu0 %v959_v9  ;;  %v993_v18 = vpack.c.bf16 %v275_v16, %v271_v15  ;;  %v272_v20 = vld [vmem:[#allocation2 + $0x60] sm:$0xff]  ;;  %v274_v23 = vld [vmem:[#allocation2 + $0x70] sm:$0xff]  ;;  %v277_v24 = vld [vmem:[#allocation2 + $0x88] sm:$0xff]  ;;  %s250_s26 = scalar_lea.vmem %s1379_s0, %s867_s21  ;;  %s256_s13 = scalar_lea.vmem %s1384_s5, %s867_s21 }
  0x4a   : > { %992 = vmatpush1.bf16.msra.mxu1 %v991_v13  ;;  %v963_v22 = vpack.c.bf16 %v272_v20, %v268_v19  ;;  %v281_v25 = vld [vmem:[#allocation2 + $0xa8] sm:$0xff]  ;;  %962 = vmatprep.subr.bf16.mxu0 %v961_v17  ;;  %v995_v26 = vpack.c.bf16 %v274_v23, %v270_v21  ;;  %v279_v28 = vld [vmem:[#allocation2 + $0x98] sm:$0xff]  ;;  %v276_v30 = vld [vmem:[#allocation2 + $0x80] sm:$0xff] }
  0x4b   : > { %994 = vmatprep.subr.bf16.mxu1 %v993_v18  ;;  %v965_v27 = vpack.c.bf16 %v281_v25, %v277_v24  ;;  %v283_v29 = vld [vmem:[#allocation2 + $0xb8] sm:$0xff]  ;;  %v280_v32 = vld [vmem:[#allocation2 + $0xa0] sm:$0xff]  ;;  %v278_v33 = vld [vmem:[#allocation2 + $0x90] sm:$0xff] }
  0x4c   : > { %v997_v31 = vpack.c.bf16 %v283_v29, %v279_v28  ;;  %v282_v34 = vld [vmem:[#allocation2 + $0xb0] sm:$0xff]  ;;  %v967_v35 = vpack.c.bf16 %v280_v32, %v276_v30  ;;  %v285_v36 = vld [vmem:[#allocation2 + $0xc8] sm:$0xff]  ;;  %v287_v38 = vld [vmem:[#allocation2 + $0xd8] sm:$0xff] }
  0x4d   : > { %964 = vmatpush1.bf16.msra.mxu0 %v963_v22  ;;  %v289_v37 = vld [vmem:[#allocation2 + $0xe8] sm:$0xff]  ;;  %v999_v39 = vpack.c.bf16 %v282_v34, %v278_v33  ;;  %v291_v41 = vld [vmem:[#allocation2 + $0xf8] sm:$0xff]  ;;  %v284_v42 = vld [vmem:[#allocation2 + $0xc0] sm:$0xff] }
  0x4e   : > { %996 = vmatpush1.bf16.msra.mxu1 %v995_v26  ;;  %966 = vmatprep.subr.bf16.mxu0 %v965_v27  ;;  %v969_v40 = vpack.c.bf16 %v289_v37, %v285_v36  ;;  %v288_v43 = vld [vmem:[#allocation2 + $0xe0] sm:$0xff]  ;;  %v1001_v44 = vpack.c.bf16 %v291_v41, %v287_v38  ;;  %v286_v45 = vld [vmem:[#allocation2 + $0xd0] sm:$0xff]  ;;  %v293_v47 = vld [vmem:[#allocation2 + $0x108] sm:$0xff] }
  0x4f   : > { %998 = vmatprep.subr.bf16.mxu1 %v997_v31  ;;  %v290_v46 = vld [vmem:[#allocation2 + $0xf0] sm:$0xff]  ;;  %v297_v48 = vld [vmem:[#allocation2 + $0x128] sm:$0xff]  ;;  %v295_v49 = vld [vmem:[#allocation2 + $0x118] sm:$0xff]  ;;  %v971_v51 = vpack.c.bf16 %v288_v43, %v284_v42 }
  0x50   : > { %v299_v50 = vld [vmem:[#allocation2 + $0x138] sm:$0xff]  ;;  %v1003_v52 = vpack.c.bf16 %v290_v46, %v286_v45  ;;  %v973_v53 = vpack.c.bf16 %v297_v48, %v293_v47  ;;  %v292_v54 = vld [vmem:[#allocation2 + $0x100] sm:$0xff]  ;;  %v294_v56 = vld [vmem:[#allocation2 + $0x110] sm:$0xff] }
  0x51   : > { %968 = vmatpush1.bf16.msra.mxu0 %v967_v35  ;;  %v296_v55 = vld [vmem:[#allocation2 + $0x120] sm:$0xff]  ;;  %v1005_v57 = vpack.c.bf16 %v299_v50, %v295_v49  ;;  %v298_v58 = vld [vmem:[#allocation2 + $0x130] sm:$0xff]  ;;  %v301_v59 = vld [vmem:[#allocation2 + $0x148] sm:$0xff] }
  0x52   : > { %1000 = vmatpush1.bf16.msra.mxu1 %v999_v39  ;;  %970 = vmatprep.subr.bf16.mxu0 %v969_v40  ;;  %v305_v60 = vld [vmem:[#allocation2 + $0x168] sm:$0xff]  ;;  %v303_v61 = vld [vmem:[#allocation2 + $0x158] sm:$0xff]  ;;  %v975_v63 = vpack.c.bf16 %v296_v55, %v292_v54  ;;  %v1007_v1 = vpack.c.bf16 %v298_v58, %v294_v56  ;;  %v300_v3 = vld [vmem:[#allocation2 + $0x140] sm:$0xff] }
  0x53   : > { %1002 = vmatprep.subr.bf16.mxu1 %v1001_v44  ;;  %v307_v62 = vld [vmem:[#allocation2 + $0x178] sm:$0xff]  ;;  %v977_v2 = vpack.c.bf16 %v305_v60, %v301_v59  ;;  %v304_v4 = vld [vmem:[#allocation2 + $0x160] sm:$0xff]  ;;  %v302_v5 = vld [vmem:[#allocation2 + $0x150] sm:$0xff] }
  0x54   : > { %v1009_v6 = vpack.c.bf16 %v307_v62, %v303_v61  ;;  %v306_v7 = vld [vmem:[#allocation2 + $0x170] sm:$0xff]  ;;  %v309_v8 = vld [vmem:[#allocation2 + $0x188] sm:$0xff]  ;;  %v311_v10 = vld [vmem:[#allocation2 + $0x198] sm:$0xff]  ;;  %v979_v12 = vpack.c.bf16 %v304_v4, %v300_v3 }
  0x55   : > { %972 = vmatpush1.bf16.msra.mxu0 %v971_v51  ;;  %v313_v9 = vld [vmem:[#allocation2 + $0x1a8] sm:$0xff]  ;;  %v315_v11 = vld [vmem:[#allocation2 + $0x1b8] sm:$0xff]  ;;  %v1011_v13 = vpack.c.bf16 %v306_v7, %v302_v5  ;;  %v308_v15 = vld [vmem:[#allocation2 + $0x180] sm:$0xff] }
  0x56   : > { %1004 = vmatpush1.bf16.msra.mxu1 %v1003_v52  ;;  %974 = vmatprep.subr.bf16.mxu0 %v973_v53  ;;  %v981_v14 = vpack.c.bf16 %v313_v9, %v309_v8  ;;  %v312_v16 = vld [vmem:[#allocation2 + $0x1a0] sm:$0xff]  ;;  %v310_v17 = vld [vmem:[#allocation2 + $0x190] sm:$0xff]  ;;  %v1013_v18 = vpack.c.bf16 %v315_v11, %v311_v10  ;;  %v317_v20 = vld [vmem:[#allocation2 + $0x1c8] sm:$0xff] }
  0x57   : > { %1006 = vmatprep.subr.bf16.mxu1 %v1005_v57  ;;  %v314_v19 = vld [vmem:[#allocation2 + $0x1b0] sm:$0xff]  ;;  %v321_v21 = vld [vmem:[#allocation2 + $0x1e8] sm:$0xff]  ;;  %v319_v22 = vld [vmem:[#allocation2 + $0x1d8] sm:$0xff]  ;;  %v983_v24 = vpack.c.bf16 %v312_v16, %v308_v15 }
  0x58   : > { %v323_v23 = vld [vmem:[#allocation2 + $0x1f8] sm:$0xff]  ;;  %v1015_v25 = vpack.c.bf16 %v314_v19, %v310_v17  ;;  %v985_v26 = vpack.c.bf16 %v321_v21, %v317_v20  ;;  %v316_v27 = vld [vmem:[#allocation2 + $0x1c0] sm:$0xff]  ;;  %v318_v30 = vld [vmem:[#allocation2 + $0x1d0] sm:$0xff] }
  0x59   : > { %976 = vmatpush1.bf16.msra.mxu0 %v975_v63  ;;  %v320_v28 = vld [vmem:[#allocation2 + $0x1e0] sm:$0xff]  ;;  %v1017_v29 = vpack.c.bf16 %v323_v23, %v319_v22  ;;  %v322_v31 = vld [vmem:[#allocation2 + $0x1f0] sm:$0xff]  ;;  %v259_v35 = vld [vmem:[%s250_s26 + $0x8] sm:$0xff] }
  0x5a   : > { %1008 = vmatpush1.bf16.msra.mxu1 %v1007_v1  ;;  %978 = vmatprep.subr.bf16.mxu0 %v977_v2  ;;  %v987_v32 = vpack.c.bf16 %v320_v28, %v316_v27  ;;  %v1019_v33 = vpack.c.bf16 %v322_v31, %v318_v30  ;;  %v258_v34 = vld [vmem:[%s250_s26] sm:$0xff]  ;;  %v573_v37 = vld [vmem:[#allocation4 + $0x88] sm:$0xff]  ;;  %v574_v48 = vld [vmem:[#allocation4 + $0x90] sm:$0xff] }
  0x5b   : > { %1010 = vmatprep.subr.bf16.mxu1 %v1009_v6  ;;  %v572_v36 = vld [vmem:[#allocation4 + $0x80] sm:$0xff]  ;;  %v605_v40 = vld [vmem:[#allocation4 + $0x188] sm:$0xff]  ;;  %v575_v49 = vld [vmem:[#allocation4 + $0x98] sm:$0xff] }
  0x5c   : > { %v604_v38 = vld [vmem:[#allocation4 + $0x180] sm:$0xff]  ;;  %v1021_v39 = vpack.c.bf16 %v573_v37, %v572_v36  ;;  %v557_v42 = vld [vmem:[#allocation4 + $0x8] sm:$0xff]  ;;  %v1025_v50 = vpack.c.bf16 %v575_v49, %v574_v48  ;;  %v607_v51 = vld [vmem:[#allocation4 + $0x198] sm:$0xff] }
  0x5d   : > { %980 = vmatpush1.bf16.msra.mxu0 %v979_v12  ;;  %v556_v41 = vld [vmem:[#allocation4] sm:$0xff]  ;;  %v1053_v43 = vpack.c.bf16 %v605_v40, %v604_v38  ;;  %v589_v46 = vld [vmem:[#allocation4 + $0x108] sm:$0xff]  ;;  %v558_v52 = vld [vmem:[#allocation4 + $0x10] sm:$0xff] }
  0x5e   : > { %1012 = vmatpush1.bf16.msra.mxu1 %v1011_v13  ;;  %982 = vmatprep.subr.bf16.mxu0 %v981_v14  ;;  %v1023_v44 = vpack.c.bf16 %v557_v42, %v556_v41  ;;  %v588_v45 = vld [vmem:[#allocation4 + $0x100] sm:$0xff]  ;;  %v559_v53 = vld [vmem:[#allocation4 + $0x18] sm:$0xff]  ;;  %v590_v56 = vld [vmem:[#allocation4 + $0x110] sm:$0xff] }
  0x5f   : > { %1014 = vmatprep.subr.bf16.mxu1 %v1013_v18  ;;  %v1055_v47 = vpack.c.bf16 %v589_v46, %v588_v45  ;;  %v1027_v55 = vpack.c.bf16 %v559_v53, %v558_v52  ;;  %v591_v57 = vld [vmem:[#allocation4 + $0x118] sm:$0xff]  ;;  %v576_v59 = vld [vmem:[#allocation4 + $0xa0] sm:$0xff]  ;;  %v577_v60 = vld [vmem:[#allocation4 + $0xa8] sm:$0xff] }
  0x60   : > { %v1059_v58 = vpack.c.bf16 %v591_v57, %v590_v56  ;;  %v608_v61 = vld [vmem:[#allocation4 + $0x1a0] sm:$0xff]  ;;  %v1029_v62 = vpack.c.bf16 %v577_v60, %v576_v59  ;;  %v609_v63 = vld [vmem:[#allocation4 + $0x1a8] sm:$0xff]  ;;  %v578_v8 = vld [vmem:[#allocation4 + $0xb0] sm:$0xff] }
  0x61   : > { %984 = vmatpush1.bf16.msra.mxu0 %v983_v24  ;;  %v560_v1 = vld [vmem:[#allocation4 + $0x20] sm:$0xff]  ;;  %v561_v2 = vld [vmem:[#allocation4 + $0x28] sm:$0xff]  ;;  %v1061_v3 = vpack.c.bf16 %v609_v63, %v608_v61  ;;  %v579_v9 = vld [vmem:[#allocation4 + $0xb8] sm:$0xff] }
  0x62   : > { %1016 = vmatpush1.bf16.msra.mxu1 %v1015_v25  ;;  %986 = vmatprep.subr.bf16.mxu0 %v985_v26  ;;  %v1031_v4 = vpack.c.bf16 %v561_v2, %v560_v1  ;;  %v592_v5 = vld [vmem:[#allocation4 + $0x120] sm:$0xff]  ;;  %v593_v6 = vld [vmem:[#allocation4 + $0x128] sm:$0xff]  ;;  %v610_v10 = vld [vmem:[#allocation4 + $0x1b0] sm:$0xff]  ;;  %v1033_v11 = vpack.c.bf16 %v579_v9, %v578_v8 }
  0x63   : > { %1018 = vmatprep.subr.bf16.mxu1 %v1017_v29  ;;  %v1063_v7 = vpack.c.bf16 %v593_v6, %v592_v5  ;;  %v611_v12 = vld [vmem:[#allocation4 + $0x1b8] sm:$0xff]  ;;  %v562_v13 = vld [vmem:[#allocation4 + $0x30] sm:$0xff]  ;;  %v580_v20 = vld [vmem:[#allocation4 + $0xc0] sm:$0xff] }
  0x64   : > { %v563_v14 = vld [vmem:[#allocation4 + $0x38] sm:$0xff]  ;;  %v1065_v15 = vpack.c.bf16 %v611_v12, %v610_v10  ;;  %v594_v17 = vld [vmem:[#allocation4 + $0x130] sm:$0xff]  ;;  %v581_v21 = vld [vmem:[#allocation4 + $0xc8] sm:$0xff] }
  0x65   : > { %988 = vmatpush1.bf16.msra.mxu0 %v987_v32  ;;  %v1035_v16 = vpack.c.bf16 %v563_v14, %v562_v13  ;;  %v595_v18 = vld [vmem:[#allocation4 + $0x138] sm:$0xff]  ;;  %v612_v22 = vld [vmem:[#allocation4 + $0x1c0] sm:$0xff]  ;;  %v1037_v23 = vpack.c.bf16 %v581_v21, %v580_v20  ;;  %v613_v24 = vld [vmem:[#allocation4 + $0x1c8] sm:$0xff] }
  0x66   : > { %1020 = vmatpush1.bf16.msra.mxu1 %v1019_v33  ;;  %1022 = vmatprep.subr.bf16.mxu0 %v1021_v39  ;;  %v1067_v19 = vpack.c.bf16 %v595_v18, %v594_v17  ;;  %v564_v25 = vld [vmem:[#allocation4 + $0x40] sm:$0xff]  ;;  %v565_v26 = vld [vmem:[#allocation4 + $0x48] sm:$0xff]  ;;  %v1069_v27 = vpack.c.bf16 %v613_v24, %v612_v22  ;;  %v582_v32 = vld [vmem:[#allocation4 + $0xd0] sm:$0xff] }
  0x67   : > { %1054 = vmatprep.subr.bf16.mxu1 %v1053_v43  ;;  %v1039_v28 = vpack.c.bf16 %v565_v26, %v564_v25  ;;  %v596_v29 = vld [vmem:[#allocation4 + $0x140] sm:$0xff]  ;;  %v597_v30 = vld [vmem:[#allocation4 + $0x148] sm:$0xff]  ;;  %v583_v33 = vld [vmem:[#allocation4 + $0xd8] sm:$0xff] }
  0x68   : > { %411 = vmatmul.mubr.f32.vlgmr.msra.gmra.mrb[0].mxu0 %v258_v34  ;;  %v1071_v31 = vpack.c.bf16 %v597_v30, %v596_v29  ;;  %v615_v36 = vld [vmem:[#allocation4 + $0x1d8] sm:$0xff]  ;;  %v566_v37 = vld [vmem:[#allocation4 + $0x50] sm:$0xff]  ;;  %v585_v45 = vld [vmem:[#allocation4 + $0xe8] sm:$0xff] }
  0x69   : > { %488 = vmatmul.mubr.f32.vlgmr.msra.gmra.mrb[0].mxu1 %v258_v34  ;;  %416 = vmatprep.mubr.f32.mxu0 %v1229_v0  ;;  %v614_v34 = vld [vmem:[#allocation4 + $0x1d0] sm:$0xff]  ;;  %v567_v38 = vld [vmem:[#allocation4 + $0x58] sm:$0xff]  ;;  %v616_v46 = vld [vmem:[#allocation4 + $0x1e0] sm:$0xff] }
  0x6a   : > { %493 = vmatprep.mubr.f32.mxu1 %v1229_v0  ;;  %1024 = vmatpush3.bf16.msra.mxu0 %v1023_v44  ;;  %v606_v0 = vld [vmem:[#allocation4 + $0x190] sm:$0xff]  ;;  %v1073_v39 = vpack.c.bf16 %v615_v36, %v614_v34  ;;  %v1043_v40 = vpack.c.bf16 %v567_v38, %v566_v37  ;;  %v599_v42 = vld [vmem:[#allocation4 + $0x158] sm:$0xff]  ;;  %v584_v44 = vld [vmem:[#allocation4 + $0xe0] sm:$0xff] }
  0x6b   : > { %1056 = vmatpush3.bf16.msra.mxu1 %v1055_v47  ;;  %v1057_v54 = vpack.c.bf16 %v607_v51, %v606_v0  ;;  %1026 = vmatprep.subr.bf16.mxu0 %v1025_v50  ;;  %v598_v41 = vld [vmem:[#allocation4 + $0x150] sm:$0xff]  ;;  %v1045_v47 = vpack.c.bf16 %v585_v45, %v584_v44  ;;  %v617_v48 = vld [vmem:[#allocation4 + $0x1e8] sm:$0xff]  ;;  %v568_v49 = vld [vmem:[#allocation4 + $0x60] sm:$0xff] }
  0x6c   : > { %417 = vmatmul.mubr.f32.gmra.mrb[2].mxu0 %v259_v35  ;;  %v1075_v43 = vpack.c.bf16 %v599_v42, %v598_v41  ;;  %v569_v0 = vld [vmem:[#allocation4 + $0x68] sm:$0xff]  ;;  %v1077_v50 = vpack.c.bf16 %v617_v48, %v616_v46  ;;  %v600_v52 = vld [vmem:[#allocation4 + $0x160] sm:$0xff]  ;;  %v587_v56 = vld [vmem:[#allocation4 + $0xf8] sm:$0xff] }
  0x6d   : > { %494 = vmatmul.mubr.f32.gmra.mrb[2].mxu1 %v259_v35  ;;  %1058 = vmatprep.subr.bf16.mxu1 %v1057_v54  ;;  %v1041_v35 = vpack.c.bf16 %v583_v33, %v582_v32  ;;  %v1047_v51 = vpack.c.bf16 %v569_v0, %v568_v49  ;;  %v601_v53 = vld [vmem:[#allocation4 + $0x168] sm:$0xff]  ;;  %v618_v57 = vld [vmem:[#allocation4 + $0x1f0] sm:$0xff]  ;;  %v619_v59 = vld [vmem:[#allocation4 + $0x1f8] sm:$0xff] }
  0x6e   : > { %1028 = vmatpush3.bf16.msra.mxu0 %v1027_v55  ;;  %v1079_v54 = vpack.c.bf16 %v601_v53, %v600_v52  ;;  %v586_v55 = vld [vmem:[#allocation4 + $0xf0] sm:$0xff]  ;;  %v571_v61 = vld [vmem:[#allocation4 + $0x78] sm:$0xff] }
  0x6f   : > { %1060 = vmatpush3.bf16.msra.mxu1 %v1059_v58  ;;  %1030 = vmatprep.subr.bf16.mxu0 %v1029_v62  ;;  %v1049_v58 = vpack.c.bf16 %v587_v56, %v586_v55  ;;  %v570_v60 = vld [vmem:[#allocation4 + $0x70] sm:$0xff]  ;;  %v1081_v62 = vpack.c.bf16 %v619_v59, %v618_v57  ;;  %v603_v2 = vld [vmem:[#allocation4 + $0x178] sm:$0xff] }
  0x70   : > { %1062 = vmatprep.subr.bf16.mxu1 %v1061_v3  ;;  %v1051_v63 = vpack.c.bf16 %v571_v61, %v570_v60  ;;  %v602_v1 = vld [vmem:[#allocation4 + $0x170] sm:$0xff] }
  0x71   : > { %v1083_v3 = vpack.c.bf16 %v603_v2, %v602_v1 }
  0x72   : > { %1032 = vmatpush3.bf16.msra.mxu0 %v1031_v4  ;;  %v326_v4 = vlaneseq }
  0x73   : > { %1064 = vmatpush3.bf16.msra.mxu1 %v1063_v7  ;;  %1034 = vmatprep.subr.bf16.mxu0 %v1033_v11  ;;  %v324_v7 = vld [vmem:[%s1381_s2] sm:$0xf] }
  0x74   : > { %1066 = vmatprep.subr.bf16.mxu1 %v1065_v15  ;;  %v327_v5 = vshrl.u32 %v326_v4, 7 }
  0x76   : > { %1036 = vmatpush3.bf16.msra.mxu0 %v1035_v16  ;;  %v328_v6 = vsub.s32 0, %v327_v5  ;;  %v336_v8 = vsub.s32 2, %v327_v5  ;;  %v332_v9 = vsub.s32 1, %v327_v5  ;;  %v340_v10 = vsub.s32 3, %v327_v5 }
  0x77   : > { %1068 = vmatpush3.bf16.msra.mxu1 %v1067_v19  ;;  %1038 = vmatprep.subr.bf16.mxu0 %v1037_v23 }
  0x78   : > { %1070 = vmatprep.subr.bf16.mxu1 %v1069_v27  ;;  %v329_v11 = vrot.slane %v324_v7, %v328_v6  ;;  %v337_v12 = vrot.slane %v324_v7, %v336_v8  ;;  %v333_v13 = vrot.slane %v324_v7, %v332_v9  ;;  %v341_v14 = vrot.slane %v324_v7, %v340_v10  ;;  %v878_v9 = vld [vmem:[%s1383_s4] ss:$0 sm:$0xff] }
  0x7a   : > { %1040 = vmatpush3.bf16.msra.mxu0 %v1039_v28 }
  0x7b   : > { %1072 = vmatpush3.bf16.msra.mxu1 %v1071_v31  ;;  %1042 = vmatprep.subr.bf16.mxu0 %v1041_v35 }
  0x7c   : > { %1074 = vmatprep.subr.bf16.mxu1 %v1073_v39 }
  0x7e   : > { %1044 = vmatpush3.bf16.msra.mxu0 %v1043_v40 }
  0x7f   : > { %1076 = vmatpush3.bf16.msra.mxu1 %v1075_v43  ;;  %1046 = vmatprep.subr.bf16.mxu0 %v1045_v47 }
  0x80   : > { %1078 = vmatprep.subr.bf16.mxu1 %v1077_v50 }
  0x82   : > { %1048 = vmatpush3.bf16.msra.mxu0 %v1047_v51 }
  0x83   : > { %1080 = vmatpush3.bf16.msra.mxu1 %v1079_v54  ;;  %1050 = vmatprep.subr.bf16.mxu0 %v1049_v58 }
  0x84   : > { %1082 = vmatprep.subr.bf16.mxu1 %v1081_v62 }
  0x86   : > { %1052 = vmatpush3.bf16.msra.mxu0 %v1051_v63 }
  0x87   : > { %1084 = vmatpush3.bf16.msra.mxu1 %v1083_v3 }
 0x13b   : > { %v412_v15 = vpop.f32.mrb[0].mxu0 }
 0x13c   : > { %v413_v16 = vadd.f32 %v412_v15, %v329_v11  ;;  %v489_v17 = vpop.f32.mrb[0].mxu1  ;;  %v414_v18 = vpop.f32.mrb[1].mxu0 }
 0x13d   : > { %v490_v19 = vadd.f32 %v489_v17, %v337_v12  ;;  %v415_v20 = vadd.f32 %v414_v18, %v333_v13  ;;  %v491_v21 = vpop.f32.mrb[1].mxu1 }
 0x13e   : > { %v870_v22 = vmul.f32 -1.442695, %v413_v16  ;;  %v492_v23 = vadd.f32 %v491_v21, %v341_v14 }
 0x13f   : > { %v872_v24 = vmul.f32 -1.442695, %v490_v19  ;;  %v871_v25 = vmul.f32 -1.442695, %v415_v20  ;;  %v418_v26 = vpop.f32.mrb[2].mxu0 }
 0x140   : > { %1119 = vpow2.f32 %v870_v22  ;;  %v873_v27 = vmul.f32 -1.442695, %v492_v23  ;;  %v419_v28 = vadd.f32 %v418_v26, %v329_v11  ;;  %v495_v29 = vpop.f32.mrb[2].mxu1  ;;  %v420_v30 = vpop.f32.mrb[3].mxu0 }
 0x141   : > { %1121 = vpow2.f32 %v872_v24  ;;  %v496_v31 = vadd.f32 %v495_v29, %v337_v12  ;;  %v421_v32 = vadd.f32 %v420_v30, %v333_v13  ;;  %v497_v33 = vpop.f32.mrb[3].mxu1 }
 0x142   : > { %1123 = vpow2.f32 %v871_v25  ;;  %v874_v34 = vmul.f32 -1.442695, %v419_v28  ;;  %v498_v35 = vadd.f32 %v497_v33, %v341_v14 }
 0x143   : > { %1125 = vpow2.f32 %v873_v27  ;;  %v876_v36 = vmul.f32 -1.442695, %v496_v31  ;;  %v875_v37 = vmul.f32 -1.442695, %v421_v32 }
 0x144   : > { %1127 = vpow2.f32 %v874_v34  ;;  %v877_v38 = vmul.f32 -1.442695, %v498_v35 }
 0x145   : > { %1129 = vpow2.f32 %v876_v36 }
 0x146   : > { %1131 = vpow2.f32 %v875_v37 }
 0x147   : > { %1133 = vpow2.f32 %v877_v38 }
 0x14a   : > { %v1120_v39 = vpop.eup %1119 }
 0x14b   : > { %v1122_v40 = vpop.eup %1121  ;;  %v524_v41 = vadd.f32 1.0, %v1120_v39 }
 0x14c   : > { %v1124_v42 = vpop.eup %1123  ;;  %v526_v43 = vadd.f32 1.0, %v1122_v40 }
 0x14d   : > { %v1126_v44 = vpop.eup %1125  ;;  %1135 = vrcp.f32 %v524_v41  ;;  %v525_v45 = vadd.f32 1.0, %v1124_v42 }
 0x14e   : > { %v1128_v46 = vpop.eup %1127  ;;  %1137 = vrcp.f32 %v526_v43  ;;  %v527_v47 = vadd.f32 1.0, %v1126_v44 }
 0x14f   : > { %v1130_v48 = vpop.eup %1129  ;;  %1139 = vrcp.f32 %v525_v45  ;;  %v528_v49 = vadd.f32 1.0, %v1128_v46 }
 0x150   : > { %v1132_v0 = vpop.eup %1131  ;;  %1141 = vrcp.f32 %v527_v47  ;;  %v530_v50 = vadd.f32 1.0, %v1130_v48 }
 0x151   : > { %v1134_v51 = vpop.eup %1133  ;;  %1143 = vrcp.f32 %v528_v49  ;;  %v529_v52 = vadd.f32 1.0, %v1132_v0 }
 0x152   : > { %1145 = vrcp.f32 %v530_v50  ;;  %v531_v53 = vadd.f32 1.0, %v1134_v51 }
 0x153   : > { %1147 = vrcp.f32 %v529_v52 }
 0x154   : > { %1149 = vrcp.f32 %v531_v53 }
 0x157   : > { %v1136_v54 = vpop.eup %1135 }
 0x158   : > { %v1138_v55 = vpop.eup %1137  ;;  %v548_v60 = vmul.f32 %v1136_v54, %v413_v16 }
 0x159   : > { %v1140_v56 = vpop.eup %1139  ;;  %v550_v63 = vmul.f32 %v1138_v55, %v490_v19 }
 0x15a   : > { %v1142_v57 = vpop.eup %1141  ;;  %v549_v58 = vmul.f32 %v1140_v56, %v415_v20 }
 0x15b   : > { %v1144_v59 = vpop.eup %1143  ;;  %v551_v61 = vmul.f32 %v1142_v57, %v492_v23 }
 0x15c   : > { %v1146_v62 = vpop.eup %1145  ;;  %691 = vmatprep.mubr.f32.mxu0 %v549_v58  ;;  %v552_v4 = vmul.f32 %v1144_v59, %v419_v28 }
 0x15d   : > { %v1148_v1 = vpop.eup %1147  ;;  %766 = vmatprep.mubr.f32.mxu1 %v551_v61  ;;  %692 = vmatmul.mubr.f32.vlgmr.msra.gmra.mrb[4].mxu0 %v548_v60  ;;  %v554_v6 = vmul.f32 %v1146_v62, %v496_v31 }
 0x15e   : > { %v1150_v2 = vpop.eup %1149  ;;  %v553_v3 = vmul.f32 %v1148_v1, %v421_v32  ;;  %767 = vmatmul.mubr.f32.vlgmr.msra.gmra.mrb[4].mxu1 %v550_v63 }
 0x15f   : > { %v555_v5 = vmul.f32 %v1150_v2, %v498_v35 }
 0x160   : > { %696 = vmatprep.mubr.f32.mxu0 %v553_v3 }
 0x161   : > { %771 = vmatprep.mubr.f32.mxu1 %v555_v5  ;;  %697 = vmatmul.mubr.f32.gmra.mrb[6].mxu0 %v552_v4 }
 0x162   : > { %772 = vmatmul.mubr.f32.gmra.mrb[6].mxu1 %v554_v6 }
 0x230   : > { %v913_v7 = vpop.f32.mrb[4].mxu0 }
 0x231   : > { %v951_v8 = vpop.f32.mrb[4].mxu1  ;;  %v914_v10 = vpop.f32.mrb[5].mxu0 }
 0x232   : > { %v915_v11 = vadd.f32 %v914_v10, %v913_v7  ;;  %v952_v12 = vpop.f32.mrb[5].mxu1 }
 0x233   : > { %v953_v13 = vadd.f32 %v952_v12, %v951_v8 }
 0x234   : > { %v694_v14 = vadd.f32 %v915_v11, %v878_v9  ;;  %v916_v15 = vpop.f32.mrb[6].mxu0 }
 0x235   : > { %v954_v16 = vpop.f32.mrb[6].mxu1  ;;  %v917_v17 = vpop.f32.mrb[7].mxu0 }
 0x236   : > { %v769_v18 = vadd.f32 %v953_v13, %v694_v14  ;;  %v918_v19 = vadd.f32 %v917_v17, %v916_v15  ;;  %v955_v20 = vpop.f32.mrb[7].mxu1 }
 0x237   : > { %v956_v21 = vadd.f32 %v955_v20, %v954_v16 }
 0x238   : > { %777 = vst [vmem:[%s256_s13] sm:$0xff] %v769_v18  ;;  %v699_v22 = vadd.f32 %v918_v19, %v878_v9 }
 0x23a   : > { %v774_v23 = vadd.f32 %v956_v21, %v699_v22 }
 0x23c   : > { %778 = vst [vmem:[%s256_s13 + $0x8] sm:$0xff] %v774_v23 }
 0x23d PF: > { %s17_s18 = sadd.s32 1, %s1221_s18  }
 0x23e   : > { %p14_p2 = scmp.ge.s32.totalorder %s17_s18, 4  }
 0x240   :  { %16 = sbr.rel (!%p14_p2) target bundleno = 2 (0x2), region = 79 }
 0x247   :  { %801 = vsyncpa [#allocation3], 1 }
 0x248   :  { %803 = vsyncpa [#allocation3 + $0x1], 1 }
 0x249   :  { %804 = vsyncpa [#allocation5], 1 }

</bundles_post_ra>
